<compile_context>
chip_gen: v7x
topology: tpu7x:2x2x1
jax: 0.10.0
libtpu: 0.0.40
codegen_flags: <defaults>
</compile_context>

<pallas_src>
import jax
import jax.numpy as jnp
from jax import lax
from jax.experimental import pallas as pl
from jax.experimental.pallas import tpu as pltpu

INPUT_SIZE = 27
HIDDEN_SIZE = 128
OUTPUT_SIZE = 27

# Packed / padded layout constants.
K_IN_PAD = 32                       # input features 27 -> 32 (8-sublane aligned)
OUT_PAD = 128                       # logits 27 -> 128 (lane-dense output)
N_PACK = HIDDEN_SIZE + OUT_PAD      # packed output columns: [ hidden | logits ]
_NEG = -1e30                        # "minus inf" bias for padded logit lanes


def _sublane_pad(b):
    return ((b + 7) // 8) * 8


# ---------------------------------------------------------------------------
# Kernels
# ---------------------------------------------------------------------------
def _log_softmax_lanes(logits):
    """Stable log-softmax over the lane axis; padded lanes carry -1e30 bias."""
    m = jnp.max(logits, axis=1, keepdims=True)
    shifted = logits - m
    lse = jnp.log(jnp.sum(jnp.exp(shifted), axis=1, keepdims=True))
    return shifted - lse


def _name_gen_step_kernel(x_ref, h_ref, wx_ref, wh_ref, b_ref, out_ref, hnew_ref):
    """Single RNN step (original module semantics) on padded operands."""
    acc = (jnp.dot(x_ref[...], wx_ref[...], preferred_element_type=jnp.float32)
           + jnp.dot(h_ref[...], wh_ref[...], preferred_element_type=jnp.float32)
           + b_ref[...])                                  # (Bp, 256)
    hnew_ref[...] = acc[:, :HIDDEN_SIZE]
    out_ref[...] = _log_softmax_lanes(acc[:, HIDDEN_SIZE:])


def _name_gen_seq_kernel(xs_ref, h0_ref, wx_ref, wh_ref, b_ref,
                         out_ref, hfin_ref, xwx_scr):
    """Whole T-step recurrence in one kernel invocation.

    xs_ref:  (T*Bp, K_IN_PAD)   all timestep inputs, resident
    out_ref: (T*Bp, OUT_PAD)    all timestep log-probs, resident
    xwx_scr: (T*Bp, N_PACK)     prologue x-projection scratch
    """
    Bp = h0_ref.shape[0]
    T = out_ref.shape[0] // Bp

    # Prologue: hoist the input projection off the serial h-dependence chain.
    # One matmul with M = T*Bp rows (better MXU utilization than M = Bp per step).
    xwx_scr[...] = (jnp.dot(xs_ref[...], wx_ref[...],
                            preferred_element_type=jnp.float32)
                    + b_ref[...])

    wh = wh_ref[...]   # hoist the weight load out of the loop

    def step(t, h):
        base = pl.multiple_of(t * Bp, 8)
        acc = (xwx_scr[pl.ds(base, Bp), :]
               + jnp.dot(h, wh, preferred_element_type=jnp.float32))  # (Bp, 256)
        out_ref[pl.ds(base, Bp), :] = _log_softmax_lanes(acc[:, HIDDEN_SIZE:])
        return acc[:, :HIDDEN_SIZE]

    # Short static trip count: fully unroll so the LLO scheduler sees the whole
    # recurrence and can overlap softmax of step t with the matmul of step t+1.
    hfin_ref[...] = lax.fori_loop(0, T, step, h0_ref[...], unroll=True)


# ---------------------------------------------------------------------------
# Wrappers
# ---------------------------------------------------------------------------
@jax.jit
def name_generator_forward(x, h, packed_params):
    """Single step (original module semantics).

    x: (B, INPUT_SIZE), h: (B, HIDDEN_SIZE) ->
    (log_probs (B, OUTPUT_SIZE), new_hidden (B, HIDDEN_SIZE))."""
    wx, wh, b = packed_params
    B = x.shape[0]
    Bp = _sublane_pad(B)

    x_p = jnp.zeros((Bp, K_IN_PAD), jnp.float32).at[:B, :INPUT_SIZE].set(x)
    h_p = jnp.zeros((Bp, HIDDEN_SIZE), jnp.float32).at[:B].set(h)

    vmem = pl.BlockSpec(memory_space=pltpu.VMEM)
    out, h_new = pl.pallas_call(
        _name_gen_step_kernel,
        out_shape=(jax.ShapeDtypeStruct((Bp, OUT_PAD), jnp.float32),
                   jax.ShapeDtypeStruct((Bp, HIDDEN_SIZE), jnp.float32)),
        in_specs=[vmem] * 5,
        out_specs=(vmem, vmem),
    )(x_p, h_p, wx, wh, b)
    return out[:B, :OUTPUT_SIZE], h_new[:B]


@jax.jit
def name_generator_sequence(xs, h0, packed_params):
    """Fused timestep loop: all T steps in ONE pallas_call, no grid.

    xs: (T, B, INPUT_SIZE), h0: (B, HIDDEN_SIZE) ->
    (log_probs (T, B, OUTPUT_SIZE), final_hidden (B, HIDDEN_SIZE))."""
    wx, wh, b = packed_params
    T, B, _ = xs.shape
    Bp = _sublane_pad(B)

    # Pad once wrapper-side; flatten (T, Bp) -> rows so the kernel sees a single
    # lane-aligned 2-D slab (no in-kernel reshapes).
    xs_p = (jnp.zeros((T, Bp, K_IN_PAD), jnp.float32)
            .at[:, :B, :INPUT_SIZE].set(xs)
            .reshape(T * Bp, K_IN_PAD))
    h0_p = jnp.zeros((Bp, HIDDEN_SIZE), jnp.float32).at[:B].set(h0)

    vmem = pl.BlockSpec(memory_space=pltpu.VMEM)
    outs, h_fin = pl.pallas_call(
        _name_gen_seq_kernel,
        out_shape=(jax.ShapeDtypeStruct((T * Bp, OUT_PAD), jnp.float32),
                   jax.ShapeDtypeStruct((Bp, HIDDEN_SIZE), jnp.float32)),
        in_specs=[vmem] * 5,
        out_specs=(vmem, vmem),
        scratch_shapes=[pltpu.VMEM((T * Bp, N_PACK), jnp.float32)],
    )(xs_p, h0_p, wx, wh, b)

    outs = outs.reshape(T, Bp, OUT_PAD)[:, :B, :OUTPUT_SIZE]
    return outs, h_fin[:B]


# ---------------------------------------------------------------------------
# Parameters (PyTorch nn.Linear-equivalent layout) + packing
# ---------------------------------------------------------------------------
def init_params(key):
    """Mirror nn.Linear init. Returns weights in torch layout:
    w_h (HIDDEN, IN+HID), b_h (HIDDEN,), w_o (OUT, IN+HID), b_o (OUT,)."""
    in_features = INPUT_SIZE + HIDDEN_SIZE
    bound = 1.0 / jnp.sqrt(jnp.float32(in_features))
    k1, k2, k3, k4 = jax.random.split(key, 4)
    w_h = jax.random.uniform(k1, (HIDDEN_SIZE, in_features), jnp.float32, -bound, bound)
    b_h = jax.random.uniform(k2, (HIDDEN_SIZE,), jnp.float32, -bound, bound)
    w_o = jax.random.uniform(k3, (OUTPUT_SIZE, in_features), jnp.float32, -bound, bound)
    b_o = jax.random.uniform(k4, (OUTPUT_SIZE,), jnp.float32, -bound, bound)
    return w_h, b_h, w_o, b_o


def pack_params(w_h, b_h, w_o, b_o):
    """One-time (wrapper-side) packing into padded, column-fused kernel weights."""
    w_h_t = w_h.T      # (IN+HID, HIDDEN)
    w_o_t = w_o.T      # (IN+HID, OUTPUT)

    wx = jnp.zeros((K_IN_PAD, N_PACK), jnp.float32)
    wx = wx.at[:INPUT_SIZE, :HIDDEN_SIZE].set(w_h_t[:INPUT_SIZE])
    wx = wx.at[:INPUT_SIZE, HIDDEN_SIZE:HIDDEN_SIZE + OUTPUT_SIZE].set(w_o_t[:INPUT_SIZE])

    wh = jnp.zeros((HIDDEN_SIZE, N_PACK), jnp.float32)
    wh = wh.at[:, :HIDDEN_SIZE].set(w_h_t[INPUT_SIZE:])
    wh = wh.at[:, HIDDEN_SIZE:HIDDEN_SIZE + OUTPUT_SIZE].set(w_o_t[INPUT_SIZE:])

    b = jnp.full((1, N_PACK), _NEG, jnp.float32)
    b = b.at[0, :HIDDEN_SIZE].set(b_h)
    b = b.at[0, HIDDEN_SIZE:HIDDEN_SIZE + OUTPUT_SIZE].set(b_o)
    return wx, wh, b


def reference_step(x, h, w_h, b_h, w_o, b_o):
    """Pure-JAX reference matching the torch forward."""
    hp = jax.lax.Precision.HIGHEST
    combined = jnp.concatenate([x, h], axis=1)
    hidden = jnp.dot(combined, w_h.T, precision=hp) + b_h
    logits = jnp.dot(combined, w_o.T, precision=hp) + b_o
    return jax.nn.log_softmax(logits, axis=1), hidden


# ---------------------------------------------------------------------------
if __name__ == "__main__":
    key = jax.random.PRNGKey(0)
    kp, kx = jax.random.split(key)

    w_h, b_h, w_o, b_o = init_params(kp)
    packed = pack_params(w_h, b_h, w_o, b_o)

    B, T = 2, 8
    xs = jax.random.normal(kx, (T, B, INPUT_SIZE), jnp.float32)
    h0 = jnp.zeros((B, HIDDEN_SIZE), jnp.float32)   # init_hidden()

    # 1) Single-step kernel (original module semantics) vs pure-JAX reference.
    log_probs, h1 = name_generator_forward(xs[0], h0, packed)
    jax.block_until_ready((log_probs, h1))
    ref_lp, ref_h1 = reference_step(xs[0], h0, w_h, b_h, w_o, b_o)
    assert log_probs.shape == (B, OUTPUT_SIZE)
    assert h1.shape == (B, HIDDEN_SIZE)
    assert jnp.allclose(log_probs, ref_lp, atol=1e-3, rtol=1e-3)
    assert jnp.allclose(h1, ref_h1, atol=1e-3, rtol=1e-3)
    assert jnp.allclose(jnp.exp(log_probs).sum(axis=1), 1.0, atol=1e-4)

    # 2) Fused sequence kernel vs iterated pure-JAX reference.
    seq_lp, h_fin = name_generator_sequence(xs, h0, packed)
    jax.block_until_ready((seq_lp, h_fin))

    h_ref = h0
    ref_lps = []
    for t in range(T):
        lp, h_ref = reference_step(xs[t], h_ref, w_h, b_h, w_o, b_o)
        ref_lps.append(lp)
    ref_lps = jnp.stack(ref_lps)

    assert seq_lp.shape == (T, B, OUTPUT_SIZE)
    assert h_fin.shape == (B, HIDDEN_SIZE)
    assert jnp.allclose(seq_lp, ref_lps, atol=1e-3, rtol=1e-3)
    assert jnp.allclose(h_fin, h_ref, atol=1e-3, rtol=1e-3)
    assert jnp.allclose(jnp.exp(seq_lp).sum(axis=-1), 1.0, atol=1e-4)

    print("KERNEL_OK")
</pallas_src>

<mosaic_0001>
module attributes {stable_mosaic.version = 11 : i64} {
  func.func @_name_gen_step_kernel(%arg0: memref<8x32xf32, #tpu.memory_space<vmem>>, %arg1: memref<8x128xf32, #tpu.memory_space<vmem>>, %arg2: memref<32x256xf32, #tpu.memory_space<vmem>>, %arg3: memref<128x256xf32, #tpu.memory_space<vmem>>, %arg4: memref<1x256xf32, #tpu.memory_space<vmem>>, %arg5: memref<8x128xf32, #tpu.memory_space<vmem>>, %arg6: memref<8x128xf32, #tpu.memory_space<vmem>>) attributes {dimension_semantics = [], scalar_prefetch = 0 : i64, scratch_operands = 0 : i64, tpu.core_type = #tpu.core_type<tc>} {
    %c0 = arith.constant 0 : index
    %c0_0 = arith.constant 0 : index
    %0 = vector.load %arg0[%c0, %c0_0] : memref<8x32xf32, #tpu.memory_space<vmem>>, vector<8x32xf32>
    %c0_1 = arith.constant 0 : index
    %c0_2 = arith.constant 0 : index
    %1 = vector.load %arg2[%c0_1, %c0_2] : memref<32x256xf32, #tpu.memory_space<vmem>>, vector<32x256xf32>
    %cst = arith.constant dense<0.000000e+00> : vector<8x256xf32>
    %2 = tpu.matmul %0, %1, %cst {dimension_numbers = #tpu.dot_dimension_numbers<[1], [0], [0], [1], [0, 0, 1, 1], [], []>} : vector<8x32xf32>, vector<32x256xf32>, vector<8x256xf32> -> vector<8x256xf32>
    %c0_3 = arith.constant 0 : index
    %c0_4 = arith.constant 0 : index
    %3 = vector.load %arg1[%c0_3, %c0_4] : memref<8x128xf32, #tpu.memory_space<vmem>>, vector<8x128xf32>
    %c0_5 = arith.constant 0 : index
    %c0_6 = arith.constant 0 : index
    %4 = vector.load %arg3[%c0_5, %c0_6] : memref<128x256xf32, #tpu.memory_space<vmem>>, vector<128x256xf32>
    %cst_7 = arith.constant dense<0.000000e+00> : vector<8x256xf32>
    %5 = tpu.matmul %3, %4, %cst_7 {dimension_numbers = #tpu.dot_dimension_numbers<[1], [0], [0], [1], [0, 0, 1, 1], [], []>} : vector<8x128xf32>, vector<128x256xf32>, vector<8x256xf32> -> vector<8x256xf32>
    %6 = arith.addf %2, %5 : vector<8x256xf32>
    %c0_8 = arith.constant 0 : index
    %c0_9 = arith.constant 0 : index
    %7 = vector.load %arg4[%c0_8, %c0_9] : memref<1x256xf32, #tpu.memory_space<vmem>>, vector<1x256xf32>
    %8 = vector.broadcast %7 : vector<1x256xf32> to vector<8x256xf32>
    %9 = arith.addf %6, %8 : vector<8x256xf32>
    %10 = vector.extract_strided_slice %9 {offsets = [0, 0], sizes = [8, 128], strides = [1, 1]} : vector<8x256xf32> to vector<8x128xf32>
    %c0_10 = arith.constant 0 : index
    %c0_11 = arith.constant 0 : index
    %11 = vector.load %arg6[%c0_10, %c0_11] : memref<8x128xf32, #tpu.memory_space<vmem>>, vector<8x128xf32>
    tpu.vector_store %arg6[%c0_10, %c0_11], %10 {strides = array<i32>} : memref<8x128xf32, #tpu.memory_space<vmem>>, vector<8x128xf32>,
    %12 = vector.extract_strided_slice %9 {offsets = [0, 128], sizes = [8, 128], strides = [1, 1]} : vector<8x256xf32> to vector<8x128xf32>
    %cst_12 = arith.constant dense<0xFF800000> : vector<8xf32>
    %13 = vector.multi_reduction <maximumf>, %12, %cst_12 [1] : vector<8x128xf32> to vector<8xf32>
    %14 = vector.shape_cast %13 : vector<8xf32> to vector<8x1xf32>
    %15 = vector.broadcast %14 : vector<8x1xf32> to vector<8x128xf32>
    %16 = arith.subf %12, %15 : vector<8x128xf32>
    %17 = math.exp %16 : vector<8x128xf32>
    %cst_13 = arith.constant dense<0.000000e+00> : vector<8xf32>
    %18 = vector.multi_reduction <add>, %17, %cst_13 [1] : vector<8x128xf32> to vector<8xf32>
    %19 = vector.shape_cast %18 : vector<8xf32> to vector<8x1xf32>
    %20 = math.log %19 : vector<8x1xf32>
    %21 = vector.broadcast %20 : vector<8x1xf32> to vector<8x128xf32>
    %22 = arith.subf %16, %21 : vector<8x128xf32>
    %c0_14 = arith.constant 0 : index
    %c0_15 = arith.constant 0 : index
    %23 = vector.load %arg5[%c0_14, %c0_15] : memref<8x128xf32, #tpu.memory_space<vmem>>, vector<8x128xf32>
    tpu.vector_store %arg5[%c0_14, %c0_15], %22 {strides = array<i32>} : memref<8x128xf32, #tpu.memory_space<vmem>>, vector<8x128xf32>,
    return
  }
}

</mosaic_0001>

<bundles_post_ra>
// kernel: name_generator_forward.1
= control target key start
LH: loop header
LB: loop body
LE: loop exit
PB: predicated region body
PF: predicated region fallthrough
CT: control target
= control target key end

     0   :  { %12 = vsyncpa [#allocation3], 0  ;;  %s453_s0 = inlined_call_operand.vmem [shape: f32[8,32], index: 0, kind: input, shape index: {}]   ;;  %s454_s1 = inlined_call_operand.vmem [shape: f32[8,128], index: 1, kind: input, shape index: {}]   ;;  %s455_s2 = inlined_call_operand.hbm [shape: f32[32,256], index: 2, kind: input, shape index: {}]   ;;  %s456_s3 = inlined_call_operand.hbm [shape: f32[128,256], index: 3, kind: input, shape index: {}]   ;;  %s457_s4 = inlined_call_operand.vmem [shape: f32[1,256], index: 4, kind: input, shape index: {}]   ;;  %s458_s5 = inlined_call_operand.vmem [shape: f32[8,128], index: 5, kind: output, shape index: {0}]   ;;  %s459_s6 = inlined_call_operand.vmem [shape: f32[8,128], index: 6, kind: output, shape index: {1}]  }
   0x1   :  { %13 = vsyncpa [#allocation5], 0  ;;  %s374_s21 = smov [#allocation2]   ;;  %s326_s25 = scalar_lea.hbm %s455_s2, 1024 }
   0x2   :  { %s23_s22 = sshll.u32 %s374_s21, 4  ;;  %p327_p0 = scmp.ne.s32.totalorder %s455_s2, %s326_s25  ;;  %s24_s22 = int_to_ptr.vmem [resolvable:$true] %s23_s22 }
   0x3   :  { %p330_p1 = scmp.lt.u32.totalorder %s326_s25, %s455_s2 }
   0x5   :  { %p332_p2 = pnand %p330_p1, %p327_p0 }
   0x7   :  { %335 = shalt.err (!%p332_p2)
}
   0x8   :  { %s336_s30 = scalar_lea.vmem %s24_s22, 1024  ;;  %p341_p4 = scmp.lt.s32.totalorder %s24_s22, %s24_s22 }
   0x9   :  { %p337_p3 = scmp.ne.s32.totalorder %s24_s22, %s336_s30  ;;  %p342_p5 = scmp.lt.s32.totalorder %s336_s30, %s336_s30 }
   0xb   :  { %p343_p6 = por %p342_p5, %p341_p4 }
   0xd   :  { %p344_p7 = pnand %p343_p6, %p337_p3 }
   0xf   :  { %347 = shalt.err (!%p344_p7)
}
  0x10   :  { %s375_s7 = smov 256   ;;  %s376_s8 = smov 16  }
  0x11   :  { %29 = dma.hbm_to_vmem [thread:$0]  %s455_s2, 1024, %s24_s22, [#allocation3], %s375_s7, %s375_s7, %s376_s8  }
  0x12   :  { %s377_s11 = smov [#allocation4]   ;;  %s348_s15 = scalar_lea.hbm %s456_s3, 4096 }
  0x13   :  { %s35_s12 = sshll.u32 %s377_s11, 4  ;;  %p349_p8 = scmp.ne.s32.totalorder %s456_s3, %s348_s15  ;;  %s36_s12 = int_to_ptr.vmem [resolvable:$true] %s35_s12 }
  0x14   :  { %p352_p9 = scmp.lt.u32.totalorder %s348_s15, %s456_s3 }
  0x16   :  { %p354_p10 = pnand %p352_p9, %p349_p8 }
  0x18   :  { %357 = shalt.err (!%p354_p10)
}
  0x19   :  { %s358_s20 = scalar_lea.vmem %s36_s12, 4096  ;;  %p363_p12 = scmp.lt.s32.totalorder %s36_s12, %s36_s12 }
  0x1a   :  { %p359_p11 = scmp.ne.s32.totalorder %s36_s12, %s358_s20  ;;  %p364_p13 = scmp.lt.s32.totalorder %s358_s20, %s358_s20 }
  0x1c   :  { %p365_p0 = por %p364_p13, %p363_p12 }
  0x1e   :  { %p366_p1 = pnand %p365_p0, %p359_p11 }
  0x20   :  { %369 = shalt.err (!%p366_p1)
}
  0x21   :  { %41 = dma.hbm_to_vmem [thread:$0]  %s456_s3, 4096, %s36_s12, [#allocation5], %s375_s7, %s375_s7, %s376_s8  }
  0x22   :  { %370 = dma.done.wait [#allocation3], 1024  }
  0x23   :  { %371 = vsyncadd [#allocation3], 4294966272 }
  0x24   :  { %372 = dma.done.wait [#allocation5], 4096  }
  0x25   :  { %373 = vsyncadd [#allocation5], 4294963200  ;;  %v378_v0 = vmov 0.0   ;;  %v61_v1 = vld [vmem:[#allocation4 + $0x8] sm:$0xff]  ;;  %v63_v2 = vld [vmem:[#allocation4 + $0x18] sm:$0xff]  ;;  %vm163_vm0 = vcmask 261120  }
  0x26   :  { %231 = vmatprep.mubr.f32.mxu0 %v378_v0  ;;  %156 = vmatprep.mubr.f32.mxu1 %v378_v0  ;;  %v60_v3 = vld [vmem:[#allocation4] sm:$0xff]  ;;  %v275_v4 = vpack.c.bf16 %v63_v2, %v61_v1  ;;  %v62_v5 = vld [vmem:[#allocation4 + $0x10] sm:$0xff]  ;;  %v65_v6 = vld [vmem:[#allocation4 + $0x28] sm:$0xff]  ;;  %v240_v1 = vlaneseq }
  0x27   :  { %v67_v7 = vld [vmem:[#allocation4 + $0x38] sm:$0xff]  ;;  %v277_v8 = vpack.c.bf16 %v62_v5, %v60_v3  ;;  %v64_v10 = vld [vmem:[#allocation4 + $0x20] sm:$0xff]  ;;  %v66_v11 = vld [vmem:[#allocation4 + $0x30] sm:$0xff] }
  0x28   :  { %v279_v9 = vpack.c.bf16 %v67_v7, %v65_v6  ;;  %v69_v12 = vld [vmem:[#allocation4 + $0x48] sm:$0xff]  ;;  %276 = vmatprep.subr.bf16.mxu1 %v275_v4  ;;  %v71_v13 = vld [vmem:[#allocation4 + $0x58] sm:$0xff]  ;;  %v281_v14 = vpack.c.bf16 %v66_v11, %v64_v10  ;;  %v68_v16 = vld [vmem:[#allocation4 + $0x40] sm:$0xff]  ;;  %v241_v2 = vshrl.u32 %v240_v1, 7 }
  0x29   :  { %278 = vmatpush1.bf16.msra.mxu1 %v277_v8  ;;  %v283_v15 = vpack.c.bf16 %v71_v13, %v69_v12  ;;  %v70_v17 = vld [vmem:[#allocation4 + $0x50] sm:$0xff]  ;;  %v73_v18 = vld [vmem:[#allocation4 + $0x68] sm:$0xff]  ;;  %v75_v19 = vld [vmem:[#allocation4 + $0x78] sm:$0xff] }
  0x2a   :  { %280 = vmatprep.subr.bf16.mxu1 %v279_v9  ;;  %v285_v20 = vpack.c.bf16 %v70_v17, %v68_v16  ;;  %v72_v21 = vld [vmem:[#allocation4 + $0x60] sm:$0xff]  ;;  %v52_v22 = vld [vmem:[#allocation2 + $0x8] sm:$0xff]  ;;  %v54_v23 = vld [vmem:[#allocation2 + $0x18] sm:$0xff]  ;;  %v287_v24 = vpack.c.bf16 %v75_v19, %v73_v18  ;;  %v242_v3 = vsub.s32 0, %v241_v2  ;;  %v246_v5 = vsub.s32 1, %v241_v2 }
  0x2b   :  { %v74_v25 = vld [vmem:[#allocation4 + $0x70] sm:$0xff]  ;;  %v307_v26 = vpack.c.bf16 %v54_v23, %v52_v22  ;;  %v51_v27 = vld [vmem:[#allocation2] sm:$0xff]  ;;  %v77_v29 = vld [vmem:[#allocation4 + $0x88] sm:$0xff] }
  0x2c   :  { %v53_v28 = vld [vmem:[#allocation2 + $0x10] sm:$0xff]  ;;  %v79_v30 = vld [vmem:[#allocation4 + $0x98] sm:$0xff]  ;;  %v56_v32 = vld [vmem:[#allocation2 + $0x28] sm:$0xff]  ;;  %v289_v34 = vpack.c.bf16 %v74_v25, %v72_v21 }
  0x2d   :  { %282 = vmatpush1.bf16.msra.mxu1 %v281_v14  ;;  %v309_v31 = vpack.c.bf16 %v53_v28, %v51_v27  ;;  %308 = vmatprep.subr.bf16.mxu0 %v307_v26  ;;  %v58_v33 = vld [vmem:[#allocation2 + $0x38] sm:$0xff]  ;;  %v55_v36 = vld [vmem:[#allocation2 + $0x20] sm:$0xff]  ;;  %v57_v37 = vld [vmem:[#allocation2 + $0x30] sm:$0xff]  ;;  %v291_v38 = vpack.c.bf16 %v79_v30, %v77_v29 }
  0x2e   :  { %284 = vmatprep.subr.bf16.mxu1 %v283_v15  ;;  %v311_v35 = vpack.c.bf16 %v58_v33, %v56_v32  ;;  %v76_v39 = vld [vmem:[#allocation4 + $0x80] sm:$0xff]  ;;  %v78_v40 = vld [vmem:[#allocation4 + $0x90] sm:$0xff]  ;;  %v313_v41 = vpack.c.bf16 %v57_v37, %v55_v36  ;;  %v81_v42 = vld [vmem:[#allocation4 + $0xa8] sm:$0xff] }
  0x2f   :  { %310 = vmatpush1.bf16.msra.mxu0 %v309_v31  ;;  %v83_v43 = vld [vmem:[#allocation4 + $0xb8] sm:$0xff]  ;;  %v293_v44 = vpack.c.bf16 %v78_v40, %v76_v39  ;;  %v50_v45 = vld [vmem:[%s453_s0] sm:$0xff]  ;;  %v82_v48 = vld [vmem:[#allocation4 + $0xb0] sm:$0xff] }
  0x30   :  { %312 = vmatprep.subr.bf16.mxu0 %v311_v35  ;;  %v295_v46 = vpack.c.bf16 %v83_v43, %v81_v42  ;;  %v80_v47 = vld [vmem:[#allocation4 + $0xa0] sm:$0xff]  ;;  %v85_v49 = vld [vmem:[#allocation4 + $0xc8] sm:$0xff]  ;;  %v87_v50 = vld [vmem:[#allocation4 + $0xd8] sm:$0xff] }
  0x31   :  { %286 = vmatpush1.bf16.msra.mxu1 %v285_v20  ;;  %v297_v51 = vpack.c.bf16 %v82_v48, %v80_v47  ;;  %v299_v52 = vpack.c.bf16 %v87_v50, %v85_v49  ;;  %v84_v53 = vld [vmem:[#allocation4 + $0xc0] sm:$0xff]  ;;  %v86_v54 = vld [vmem:[#allocation4 + $0xd0] sm:$0xff]  ;;  %v89_v55 = vld [vmem:[#allocation4 + $0xe8] sm:$0xff] }
  0x32   :  { %288 = vmatprep.subr.bf16.mxu1 %v287_v24  ;;  %v91_v56 = vld [vmem:[#allocation4 + $0xf8] sm:$0xff]  ;;  %v301_v57 = vpack.c.bf16 %v86_v54, %v84_v53  ;;  %v88_v59 = vld [vmem:[#allocation4 + $0xe0] sm:$0xff]  ;;  %v90_v60 = vld [vmem:[#allocation4 + $0xf0] sm:$0xff] }
  0x33   :  { %314 = vmatpush1.bf16.msra.mxu0 %v313_v41  ;;  %v303_v58 = vpack.c.bf16 %v91_v56, %v89_v55  ;;  %v305_v61 = vpack.c.bf16 %v90_v60, %v88_v59  ;;  %v59_v62 = vld [vmem:[%s454_s1] sm:$0xff] }
  0x34   :  { %v238_v4 = vld [vmem:[%s457_s4] sm:$0x3] }
  0x35   :  { %290 = vmatpush1.bf16.msra.mxu1 %v289_v34  ;;  %v243_v6 = vrot.slane %v238_v4, %v242_v3  ;;  %v247_v8 = vrot.slane %v238_v4, %v246_v5 }
  0x36   :  { %292 = vmatprep.subr.bf16.mxu1 %v291_v38  ;;  %274 = vmatmul.mubr.msk.f32.vlgmr.msra.gmra.mrb[0].mxu0 %vm163_vm0, %v50_v45 }
  0x39   :  { %294 = vmatpush1.bf16.msra.mxu1 %v293_v44 }
  0x3a   :  { %296 = vmatprep.subr.bf16.mxu1 %v295_v46 }
  0x3d   :  { %298 = vmatpush1.bf16.msra.mxu1 %v297_v51 }
  0x3e   :  { %300 = vmatprep.subr.bf16.mxu1 %v299_v52 }
  0x41   :  { %302 = vmatpush1.bf16.msra.mxu1 %v301_v57 }
  0x42   :  { %304 = vmatprep.subr.bf16.mxu1 %v303_v58 }
  0x45   :  { %306 = vmatpush1.bf16.msra.mxu1 %v305_v61 }
  0x48   :  { %157 = vmatmul.mubr.f32.vlgmr.msra.gmra.mrb[0].mxu1 %v59_v62 }
 0x109   :  { %v233_v63 = vpop.f32.mrb[0].mxu0 }
 0x10a   :  { %v235_v0 = vpop.f32.mrb[1].mxu0 }
 0x11b   :  { %v158_v7 = vpop.f32.mrb[0].mxu1 }
 0x11c   :  { %v234_v9 = vadd.f32 %v233_v63, %v158_v7  ;;  %v160_v10 = vpop.f32.mrb[1].mxu1 }
 0x11d   :  { %v236_v11 = vadd.f32 %v235_v0, %v160_v10 }
 0x11e   :  { %v250_v12 = vadd.f32 %v243_v6, %v234_v9 }
 0x11f   :  { %v251_v13 = vadd.f32 %v247_v8, %v236_v11 }
 0x120   :  { %252 = vst [vmem:[%s459_s6] sm:$0xff] %v250_v12 }
 0x121   :  { %253 = vmax.xlane.f32.xlu0 %v251_v13 }
 0x1ae   :  { %v254_v14 = vpop.xlane.xlu0 %253 }
 0x1af   :  { %v255_v15 = vsub.f32 %v251_v13, %v254_v14 }
 0x1b1   :  { %v256_v16 = vmul.f32 1.442695, %v255_v15 }
 0x1b3   :  { %322 = vpow2.f32 %v256_v16 }
 0x1bd   :  { %v323_v17 = vpop.eup %322 }
 0x1be   :  { %258 = vadd.xlane.f32.xlu0 %v323_v17 }
 0x24b   :  { %v259_v18 = vpop.xlane.xlu0 %258 }
 0x24c   :  { %324 = vlog2.f32 %v259_v18 }
 0x256   :  { %v325_v19 = vpop.eup %324 }
 0x257   :  { %v261_v20 = vmul.f32 0.6931472, %v325_v19 }
 0x259   :  { %v262_v21 = vsub.f32 %v255_v15, %v261_v20 }
 0x25b   :  { %263 = vst [vmem:[%s458_s5] sm:$0xff] %v262_v21 }
 0x25c   :  { %272 = vsyncpa [#allocation3], 1 }
 0x25d   :  { %273 = vsyncpa [#allocation5], 1 }

</bundles_post_ra>
